<compile_context>
chip_gen: v5e
topology: v5e:2x2
jax: 0.10.0
libtpu: 0.0.40
codegen_flags: <defaults>
</compile_context>

<pallas_src>
import functools
import math

import jax
import jax.numpy as jnp
from jax import lax
from jax.experimental import pallas as pl
from jax.experimental.pallas import tpu as pltpu

_LANES = 128
_SUBLANES = 8


def _vmem_capacity_bytes():
    """Per-core VMEM capacity; falls back to the v7x minimum (64 MiB)."""
    try:
        cap = getattr(pltpu.get_tpu_info(), "vmem_capacity_bytes", None)
        if cap:
            return int(cap)
    except Exception:
        pass
    return 64 << 20


def _pool_sum_single_kernel(x_ref, o_ref):
    """Whole frames axis resident in one block: plain f32 reduction, no scratch."""
    o_ref[...] = jnp.sum(x_ref[...].astype(jnp.float32), axis=-1).astype(o_ref.dtype)


def _pool_sum_tiled_kernel(x_ref, o_ref, acc_ref, *, total_t, t_tile):
    """Streaming reduction over frame tiles.

    x_ref:   (bB, dD, tT)   input tile
    o_ref:   (bB, dD)       output tile (same block for every T grid step)
    acc_ref: (bB, dD, 128)  f32 per-lane partial sums (one XLU reduce at the end)
    """
    j = pl.program_id(2)

    @pl.when(j == 0)
    def _init():
        acc_ref[...] = jnp.zeros_like(acc_ref)

    num_chunks = t_tile // _LANES          # static (t_tile is a multiple of 128)
    needs_mask = (total_t % t_tile) != 0   # static: only mask when a ragged tail exists
    tile_t0 = j * t_tile                   # global frame offset of this tile
    lane_ids = (lax.broadcasted_iota(jnp.int32, (1, 1, _LANES), 2)
                if needs_mask else None)   # hoisted out of the chunk loop

    def body(c, carry):
        start = pl.multiple_of(c * _LANES, _LANES)
        chunk = x_ref[:, :, pl.ds(start, _LANES)].astype(jnp.float32)
        if needs_mask:
            # Lane l of chunk c is a valid frame iff  tile_t0 + c*128 + l < total_t.
            limit = total_t - tile_t0 - c * _LANES
            chunk = jnp.where(lane_ids < limit, chunk, 0.0)
        acc_ref[...] += chunk              # pure VPU adds; no per-step XLU reduce
        return carry

    lax.fori_loop(0, num_chunks, body, 0, unroll=(num_chunks <= 8))

    @pl.when(j == pl.num_programs(2) - 1)
    def _finalize():
        o_ref[...] = jnp.sum(acc_ref[...], axis=-1).astype(o_ref.dtype)


def learnable_pooling(x, w=None, b=None, *, t_tile=None, b_tile=None):
    """Forward of LearnablePooling.  x: (B, D, T); w: (1, D), b: (1,) are unused.

    The query Linear + softmax are dead (softmax over a size-1 dim is exactly
    1.0), so the forward reduces to x.sum(-1).  bf16 inputs accumulate in f32
    and are cast once at the end (small tolerance vs. a low-precision
    reference, not bit-for-bit).  Returns (B, D) in x.dtype.
    """
    del w, b  # dead parameters
    B, D, T = x.shape
    itemsize = jnp.dtype(x.dtype).itemsize

    # ---- VMEM budget (generation-aware; conservative v7x fallback). ----
    vmem_cap = _vmem_capacity_bytes()
    vmem_limit = int(vmem_cap * 0.6)        # ~38 MiB v7x, ~77 MiB v5e/v6e
    budget = int(vmem_limit * 0.75)         # for the double-buffered streamed input

    # ---- Batch tile: full batch when small, else sublane-aligned 8. ----
    if b_tile is not None:
        bB = max(1, min(int(b_tile), B))
    else:
        bB = B if B <= _SUBLANES else _SUBLANES
    if bB < B and bB % _SUBLANES != 0:
        bB = min(B, ((bB + _SUBLANES - 1) // _SUBLANES) * _SUBLANES)
    n_b = pl.cdiv(B, bB)

    # ---- Optional parallel split of D (lane-aligned only: dD multiple of 128). ----
    # Gives both v7x TensorCores work when B alone yields < 2 parallel tiles.
    n_d, dD = 1, D
    if n_b < 2 and D % (2 * _LANES) == 0:
        n_d, dD = 2, D // 2

    # Very large D: keep splitting (lane-aligned) so a minimal double-buffered
    # (bB, dD, 128) block + the f32 partial-sum scratch fits the budget; only
    # then fall back to shrinking bB.
    def _min_bytes(bb, dd):
        return 2 * bb * dd * _LANES * itemsize + bb * dd * _LANES * 4
    while _min_bytes(bB, dD) > budget and dD % (2 * _LANES) == 0:
        n_d, dD = n_d * 2, dD // 2
    while _min_bytes(bB, dD) > budget and bB > 1:
        bB = max(1, bB // 2)
        n_b = pl.cdiv(B, bB)

    # ---- Frame tile: spend budget on tT (contiguous DMA run = tT * itemsize). ----
    acc_bytes = bB * dD * _LANES * 4
    out_bytes = 2 * bB * dD * max(itemsize, 4)
    stream_budget = max(budget - acc_bytes - out_bytes,
                        2 * bB * dD * _LANES * itemsize)

    per_col_stream = 2 * bB * dD * itemsize           # double-buffered input bytes / frame
    per_col_single = per_col_stream + bB * dD * 4     # + f32 upcast temp in the small path

    user_tiled = t_tile is not None and int(t_tile) < T
    if not user_tiled and T * per_col_single <= stream_budget:
        tT, n_t, tiled = T, 1, False                  # whole T resident: no scratch/reduction axis
    else:
        if user_tiled:
            tT = max(_LANES, (int(t_tile) // _LANES) * _LANES)   # enforce 128-multiple
        else:
            tT = max(_LANES, (stream_budget // per_col_stream) // _LANES * _LANES)
        tT = min(tT, pl.cdiv(T, _LANES) * _LANES)
        n_t = pl.cdiv(T, tT)
        tiled = True

    # vmem limit: at least what this tiling needs (+ headroom), capped near capacity.
    if tiled:
        needed = per_col_stream * tT + acc_bytes + out_bytes + (2 << 20)
    else:
        needed = per_col_single * T + out_bytes + (2 << 20)
    vmem_limit = int(min(int(vmem_cap * 0.9), max(vmem_limit, needed)))

    out_shape = jax.ShapeDtypeStruct((B, D), x.dtype)

    if tiled:
        kernel = functools.partial(_pool_sum_tiled_kernel, total_t=T, t_tile=tT)
        grid = (n_b, n_d, n_t)                        # reduction axis last, by convention
        in_specs = [pl.BlockSpec((bB, dD, tT), lambda i, d, j: (i, d, j))]
        out_specs = pl.BlockSpec((bB, dD), lambda i, d, j: (i, d))
        scratch = [pltpu.VMEM((bB, dD, _LANES), jnp.float32)]
        semantics = ("parallel", "parallel", "arbitrary")
    else:
        kernel = _pool_sum_single_kernel
        grid = (n_b, n_d)
        in_specs = [pl.BlockSpec((bB, dD, T), lambda i, d: (i, d, 0))]
        out_specs = pl.BlockSpec((bB, dD), lambda i, d: (i, d))
        scratch = []
        semantics = ("parallel", "parallel")

    return pl.pallas_call(
        kernel,
        out_shape=out_shape,
        grid_spec=pltpu.PrefetchScalarGridSpec(
            num_scalar_prefetch=0,
            grid=grid,
            in_specs=in_specs,
            out_specs=out_specs,
            scratch_shapes=scratch,
        ),
        compiler_params=pltpu.CompilerParams(
            dimension_semantics=semantics,
            vmem_limit_bytes=vmem_limit,
        ),
    )(x)


def reference(x, w, b):
    """Pure-JAX mirror of the PyTorch forward (keeps the dead softmax for fidelity)."""
    xf = x.astype(jnp.float32)
    q = jnp.einsum("bdt,d->bt", xf, w[0].astype(jnp.float32)) + b[0]  # Linear(D,1)
    scores = jax.nn.softmax(q[:, None, :], axis=1)                    # size-1 dim -> all 1.0
    return jnp.sum(xf * scores, axis=-1)                              # (B, D) f32


if __name__ == "__main__":
    key = jax.random.PRNGKey(0)
    kx, kw, kb, kx2, kx3 = jax.random.split(key, 5)

    # Small shapes implied by the module: batch=2, embedding_dim=32, num_frames=16.
    B, D, T = 2, 32, 16
    x = jax.random.normal(kx, (B, D, T), dtype=jnp.float32)
    bound = 1.0 / math.sqrt(D)
    w = jax.random.uniform(kw, (1, D), minval=-bound, maxval=bound, dtype=jnp.float32)
    b = jax.random.uniform(kb, (1,), minval=-bound, maxval=bound, dtype=jnp.float32)

    out = jax.block_until_ready(learnable_pooling(x, w, b))
    ref = reference(x, w, b)
    assert out.shape == (B, D)
    assert jnp.allclose(out, ref, atol=1e-5, rtol=1e-5), "mismatch (small / single-block path)"

    # Larger f32 shape exercising the (parallel B, reduction T) tiled path.
    B2, D2, T2 = 16, 128, 1024
    x2 = jax.random.normal(kx2, (B2, D2, T2), dtype=jnp.float32)
    out2 = jax.block_until_ready(learnable_pooling(x2, t_tile=256, b_tile=8))
    ref2 = jnp.sum(x2, axis=-1)
    assert out2.shape == (B2, D2)
    assert jnp.allclose(out2, ref2, atol=2e-3, rtol=1e-3), "mismatch (tiled f32 path)"

    # bf16 input with a ragged frame count: exercises the in-kernel tail masking
    # (no wrapper-side pad) and f32 accumulation with a single final cast.
    B3, D3, T3 = 4, 128, 1000
    x3 = jax.random.normal(kx3, (B3, D3, T3), dtype=jnp.float32).astype(jnp.bfloat16)
    out3 = jax.block_until_ready(learnable_pooling(x3, t_tile=256))
    ref3 = jnp.sum(x3.astype(jnp.float32), axis=-1)
    assert out3.shape == (B3, D3)
    assert out3.dtype == jnp.bfloat16
    assert jnp.allclose(out3.astype(jnp.float32), ref3, atol=0.5, rtol=2e-2), \
        "mismatch (tiled bf16 ragged-T path)"

    print("KERNEL_OK")
</pallas_src>

<mosaic_0001>
module attributes {stable_mosaic.version = 11 : i64} {
  func.func @_pool_sum_single_kernel(%arg0: i32, %arg1: i32, %arg2: memref<2x32x16xf32, #tpu.memory_space<vmem>>, %arg3: memref<2x32xf32, #tpu.memory_space<vmem>>) attributes {dimension_semantics = [#tpu.dimension_semantics<parallel>, #tpu.dimension_semantics<parallel>], iteration_bounds = array<i64: 1, 1>, scalar_prefetch = 0 : i64, scratch_operands = 0 : i64, tpu.core_type = #tpu.core_type<tc>, window_params = [{transform_indices = @transform_0, window_bounds = array<i64: 2, 32, 16>}, {transform_indices = @transform_1, window_bounds = array<i64: 2, 32>}]} {
    %c0 = arith.constant 0 : index
    %c0_0 = arith.constant 0 : index
    %c0_1 = arith.constant 0 : index
    %0 = vector.load %arg2[%c0, %c0_0, %c0_1] : memref<2x32x16xf32, #tpu.memory_space<vmem>>, vector<2x32x16xf32>
    %cst = arith.constant dense<0.000000e+00> : vector<2x32xf32>
    %1 = vector.multi_reduction <add>, %0, %cst [2] : vector<2x32x16xf32> to vector<2x32xf32>
    %c0_2 = arith.constant 0 : index
    %c0_3 = arith.constant 0 : index
    %2 = vector.load %arg3[%c0_2, %c0_3] : memref<2x32xf32, #tpu.memory_space<vmem>>, vector<2x32xf32>
    tpu.vector_store %arg3[%c0_2, %c0_3], %1 {strides = array<i32>} : memref<2x32xf32, #tpu.memory_space<vmem>>, vector<2x32xf32>,
    return
  }
  func.func @transform_0(%arg0: i32, %arg1: i32) -> (i32, i32, i32) {
    %c0_i32 = arith.constant 0 : i32
    %c0_i32_0 = arith.constant 0 : i32
    return %arg0, %arg1, %c0_i32 : i32, i32, i32
  }
  func.func @transform_1(%arg0: i32, %arg1: i32) -> (i32, i32) {
    %c0_i32 = arith.constant 0 : i32
    return %arg0, %arg1 : i32, i32
  }
}

</mosaic_0001>

<bundles_post_ra>
// kernel: tpu_custom_call.1
= control target key start
LH: loop header
LB: loop body
LE: loop exit
PB: predicated region body
PF: predicated region fallthrough
CT: control target
= control target key end

     0   :  { %vm17_vm0 = vcmask 130048   ;;  %s166_s0 = inlined_call_operand.vmem [shape: f32[2,32,16], index: 0, kind: input, shape index: {}]   ;;  %s167_s1 = inlined_call_operand.hbm [shape: f32[2,32], index: 1, kind: output, shape index: {}]  }
   0x1   :  { %v13_v0 = vld [vmem:[%s166_s0 + $0x20] sm:$0xff]  ;;  %v11_v2 = vld [vmem:[%s166_s0 + $0x10] sm:$0xff] }
   0x2   :  { %v9_v1 = vld [vmem:[%s166_s0] sm:$0xff]  ;;  %v30_v3 = vsel %vm17_vm0, %v13_v0, 0.0  ;;  %v24_v5 = vsel %vm17_vm0, %v11_v2, 0.0 }
   0x3   :  { %v18_v4 = vsel %vm17_vm0, %v9_v1, 0.0  ;;  %31 = vadd.xlane.f32.xlu1 %v30_v3  ;;  %25 = vadd.xlane.f32.xlu2 %v24_v5 }
   0x4   :  { %19 = vadd.xlane.f32.xlu0 %v18_v4 }
   0x5   :  { %6 = vsyncpa [#allocation3], 0  ;;  %v14_v6 = vld [vmem:[%s166_s0 + $0x28] sm:$0xff]  ;;  %v15_v8 = vld [vmem:[%s166_s0 + $0x30] sm:$0xff]  ;;  %v50_v18 = vlaneseq  ;;  %vm55_vm1 = vcmask 130112   ;;  %vm59_vm2 = vcmask 195712  }
   0x6   :  { %v10_v7 = vld [vmem:[%s166_s0 + $0x8] sm:$0xff]  ;;  %v33_v9 = vsel %vm17_vm0, %v14_v6, 0.0  ;;  %v36_v11 = vsel %vm17_vm0, %v15_v8, 0.0  ;;  %v16_v12 = vld [vmem:[%s166_s0 + $0x38] sm:$0xff]  ;;  %vm63_vm3 = vcmask 261312   ;;  %s84_s25 = sshll.u32 %s167_s1, 4  ;;  %s85_s25 = int_to_ptr.hbm [resolvable:$true] %s84_s25 }
   0x7   :  { %v21_v10 = vsel %vm17_vm0, %v10_v7, 0.0  ;;  %v12_v13 = vld [vmem:[%s166_s0 + $0x18] sm:$0xff]  ;;  %v39_v14 = vsel %vm17_vm0, %v16_v12, 0.0  ;;  %v51_v20 = vand.u32 127, %v50_v18  ;;  %s120_s0 = smov [#allocation2]   ;;  %vm72_vm4 = vcmask 1041409  }
   0x8   :  { %v27_v15 = vsel %vm17_vm0, %v12_v13, 0.0  ;;  %s82_s22 = sshll.u32 %s120_s0, 4  ;;  %vm75_vm5 = vcmask 254976   ;;  %s83_s22 = int_to_ptr.vmem [resolvable:$true] %s82_s22 }
   0x9   :  { %v53_v21 = vadd.s32 4294967288, %v51_v20  ;;  %v57_v27 = vadd.s32 4294967280, %v51_v20  ;;  %v61_v30 = vadd.s32 4294967272, %v51_v20 }
   0xb   :  { %34 = vadd.xlane.f32.xlu1 %v33_v9  ;;  %37 = vadd.xlane.f32.xlu2 %v36_v11 }
   0xc   :  { %22 = vadd.xlane.f32.xlu0 %v21_v10 }
  0x13   :  { %40 = vadd.xlane.f32.xlu1 %v39_v14 }
  0x14   :  { %28 = vadd.xlane.f32.xlu0 %v27_v15 }
  0x76   :  { %v32_v16 = vpop.xlane.xlu1 %31  ;;  %v26_v19 = vpop.xlane.xlu2 %25 }
  0x77   :  { %v20_v17 = vpop.xlane.xlu0 %19  ;;  %v65_v28 = vperm.slane %v32_v16, %v51_v20  ;;  %v58_v34 = vperm.slane %v26_v19, %v57_v27 }
  0x78   :  { %v52_v29 = vperm.slane %v20_v17, %v51_v20 }
  0x7e   :  { %v35_v22 = vpop.xlane.xlu1 %34  ;;  %v38_v26 = vpop.xlane.xlu2 %37 }
  0x7f   :  { %v23_v23 = vpop.xlane.xlu0 %22  ;;  %v66_v24 = vperm.slane %v35_v22, %v53_v21  ;;  %v68_v31 = vperm.slane %v38_v26, %v57_v27 }
  0x80   :  { %v54_v25 = vperm.slane %v23_v23, %v53_v21 }
  0x81   :  { %v67_v32 = vsel %vm55_vm1, %v66_v24, %v65_v28 }
  0x82   :  { %v56_v33 = vsel %vm55_vm1, %v54_v25, %v52_v29  ;;  %v69_v39 = vsel %vm59_vm2, %v68_v31, %v67_v32 }
  0x83   :  { %v60_v40 = vsel %vm59_vm2, %v58_v34, %v56_v33 }
  0x86   :  { %v41_v35 = vpop.xlane.xlu1 %40 }
  0x87   :  { %v29_v36 = vpop.xlane.xlu0 %28  ;;  %v70_v37 = vperm.slane %v41_v35, %v61_v30 }
  0x88   :  { %v62_v38 = vperm.slane %v29_v36, %v61_v30 }
  0x89   :  { %v71_v41 = vsel %vm63_vm3, %v70_v37, %v69_v39 }
  0x8a   :  { %v64_v42 = vsel %vm63_vm3, %v62_v38, %v60_v40 }
  0x8b   :  { %v73_v43 = vsel %vm72_vm4, %v71_v41, %v64_v42 }
  0x8c   :  { %76 = vst.msk [vmem:[#allocation2] sm:$0x3] %vm75_vm5, %v73_v43 }
  0x8d   :  { %87 = dma.vmem_to_hbm [thread:$0]  %s83_s22, 32, %s85_s25, [#allocation3]  }
  0x8e   :  { %118 = dma.done.wait [#allocation3], 32  }
  0x8f   :  { %119 = vsyncadd [#allocation3], 4294967264 }
  0x90   :  { %92 = vsyncpa [#allocation3], 1 }

</bundles_post_ra>
